<compile_context>
chip_gen: v5e
topology: v5e:2x2
jax: 0.10.0
libtpu: 0.0.40
codegen_flags: <defaults>
</compile_context>

<pallas_src>
import functools

import jax
import jax.numpy as jnp
from jax.experimental import pallas as pl
from jax.experimental.pallas import tpu as pltpu


def _softplus(x):
    # Numerically-stable softplus (matches torch.nn.Softplus(beta=1)).
    return jnp.maximum(x, 0.0) + jnp.log1p(jnp.exp(-jnp.abs(x)))


def _cnn_zt_kernel(x_ref, *refs, compute_dtype=jnp.float32):
    """refs = (w1, b1, ..., w7, b7, o_ref).

    x_ref : (C_in, tile_L)      -- channels on sublanes, positions on lanes
    w_i   : (C_out_i, C_in_i)
    b_i   : (C_out_i, 1)
    o_ref : (num_outputs, tile_L)
    """
    o_ref = refs[-1]
    wb = refs[:-1]
    n_layers = len(wb) // 2

    x = x_ref[...].astype(compute_dtype)          # (C_in, tile_L)
    c_in = x.shape[0]

    w1 = wb[0][...].astype(compute_dtype)         # (H, C_in)
    b1 = wb[1][...]                               # (H, 1), f32

    if c_in <= 8:
        # Tiny contraction dim: VPU broadcast-FMA chain instead of a
        # mostly-zero-padded MXU pass.
        h = w1[:, 0:1] * x[0:1, :]                # (H, tile_L)
        for c in range(1, c_in):
            h = h + w1[:, c:c + 1] * x[c:c + 1, :]
        h = h.astype(jnp.float32) + b1
    else:
        h = jnp.dot(w1, x, preferred_element_type=jnp.float32) + b1
    h = _softplus(h)

    for layer in range(1, n_layers):
        w = wb[2 * layer][...].astype(compute_dtype)
        b = wb[2 * layer + 1][...]
        h = jnp.dot(w, h.astype(compute_dtype),
                    preferred_element_type=jnp.float32) + b
        if layer < n_layers - 1:                  # no activation after conv7
            h = _softplus(h)

    o_ref[...] = h.astype(o_ref.dtype)


def init_params(key, input_size, hidden_size, num_outputs, dtype=jnp.float32):
    """Parameters mimicking nn.Conv1d default init (uniform +-1/sqrt(fan_in)).

    Weights are stored (C_out, C_in) -- same as PyTorch's Conv1d weight with
    the trailing kernel_size=1 axis squeezed -- and biases as (C_out, 1).
    """
    c_ins = [input_size] + [hidden_size] * 6
    c_outs = [hidden_size] * 6 + [num_outputs]
    keys = jax.random.split(key, 14)
    params = []
    for i, (cin, cout) in enumerate(zip(c_ins, c_outs)):
        bound = float(cin) ** -0.5
        w = jax.random.uniform(keys[2 * i], (cout, cin), dtype, -bound, bound)
        b = jax.random.uniform(keys[2 * i + 1], (cout, 1), dtype, -bound, bound)
        params.append((w, b))
    return params


@functools.partial(jax.jit, static_argnames=("tm", "compute_dtype"))
def cnn_zt_forward(x, params, tm=512, compute_dtype=jnp.float32):
    """x: (N, C_in, L) -> (N, num_outputs, L).  tm = position-tile (mult. of 128)."""
    N, C, L = x.shape
    num_outputs = params[-1][0].shape[0]

    # Tile the length axis; pad only if L exceeds one tile and doesn't divide.
    if L <= tm:
        bl, Lp = L, L
        xp = x
    else:
        bl = tm
        assert bl % 128 == 0, "tm must be a multiple of 128 when L > tm"
        Lp = pl.cdiv(L, bl) * bl
        xp = jnp.pad(x, ((0, 0), (0, 0), (0, Lp - L))) if Lp != L else x

    flat = []
    for w, b in params:
        flat += [w, b]
    w_specs = [pl.BlockSpec(a.shape, lambda n, l: (0, 0)) for a in flat]

    kernel = functools.partial(_cnn_zt_kernel, compute_dtype=compute_dtype)

    out = pl.pallas_call(
        kernel,
        out_shape=jax.ShapeDtypeStruct((N, num_outputs, Lp), x.dtype),
        grid_spec=pltpu.PrefetchScalarGridSpec(
            num_scalar_prefetch=0,
            grid=(N, Lp // bl),
            in_specs=[pl.BlockSpec((pl.Squeezed(), C, bl),
                                   lambda n, l: (n, 0, l))] + w_specs,
            out_specs=pl.BlockSpec((pl.Squeezed(), num_outputs, bl),
                                   lambda n, l: (n, 0, l)),
        ),
        compiler_params=pltpu.CompilerParams(
            dimension_semantics=("parallel", "parallel")),
    )(xp, *flat)

    return out[:, :, :L] if Lp != L else out


def reference_forward(x, params):
    """Pure-JAX reference mirroring the PyTorch forward (Conv1d k=1 chain)."""
    h = x  # (N, C, L)
    for i, (w, b) in enumerate(params):
        h = jnp.einsum("oc,ncl->nol", w, h) + b  # b (C_out,1) broadcasts over L
        if i < len(params) - 1:
            h = jax.nn.softplus(h)
    return h


if __name__ == "__main__":
    # Small shapes consistent with the module: Conv1d input is (N, C_in, L).
    batch = 2
    input_size = 4
    hidden_size = 32
    num_outputs = 3
    seq = 16

    key = jax.random.PRNGKey(0)
    kx, kp = jax.random.split(key)
    x = jax.random.normal(kx, (batch, input_size, seq), jnp.float32)
    params = init_params(kp, input_size, hidden_size, num_outputs)

    out = jax.block_until_ready(cnn_zt_forward(x, params))
    ref = reference_forward(x, params)
    assert out.shape == (batch, num_outputs, seq), out.shape
    assert jnp.allclose(out, ref, atol=1e-4, rtol=1e-4), \
        float(jnp.max(jnp.abs(out - ref)))

    # Exercise the multi-tile (padded) path as well: L > tm.
    x2 = jax.random.normal(jax.random.PRNGKey(1),
                           (batch, input_size, 200), jnp.float32)
    out2 = jax.block_until_ready(cnn_zt_forward(x2, params, tm=128))
    ref2 = reference_forward(x2, params)
    assert out2.shape == (batch, num_outputs, 200), out2.shape
    assert jnp.allclose(out2, ref2, atol=1e-4, rtol=1e-4), \
        float(jnp.max(jnp.abs(out2 - ref2)))

    print("KERNEL_OK")
</pallas_src>

<mosaic_0001>
module attributes {stable_mosaic.version = 11 : i64} {
  func.func @_cnn_zt_kernel(%arg0: i32, %arg1: i32, %arg2: memref<1x4x16xf32, #tpu.memory_space<vmem>>, %arg3: memref<32x4xf32, #tpu.memory_space<vmem>>, %arg4: memref<32x1xf32, #tpu.memory_space<vmem>>, %arg5: memref<32x32xf32, #tpu.memory_space<vmem>>, %arg6: memref<32x1xf32, #tpu.memory_space<vmem>>, %arg7: memref<32x32xf32, #tpu.memory_space<vmem>>, %arg8: memref<32x1xf32, #tpu.memory_space<vmem>>, %arg9: memref<32x32xf32, #tpu.memory_space<vmem>>, %arg10: memref<32x1xf32, #tpu.memory_space<vmem>>, %arg11: memref<32x32xf32, #tpu.memory_space<vmem>>, %arg12: memref<32x1xf32, #tpu.memory_space<vmem>>, %arg13: memref<32x32xf32, #tpu.memory_space<vmem>>, %arg14: memref<32x1xf32, #tpu.memory_space<vmem>>, %arg15: memref<3x32xf32, #tpu.memory_space<vmem>>, %arg16: memref<3x1xf32, #tpu.memory_space<vmem>>, %arg17: memref<1x3x16xf32, #tpu.memory_space<vmem>>) attributes {dimension_semantics = [#tpu.dimension_semantics<parallel>, #tpu.dimension_semantics<parallel>], iteration_bounds = array<i64: 2, 1>, scalar_prefetch = 0 : i64, scratch_operands = 0 : i64, tpu.core_type = #tpu.core_type<tc>, window_params = [{transform_indices = @transform_0, window_bounds = array<i64: 1, 4, 16>}, {pipeline_mode = #tpu.pipeline_mode<synchronous>, transform_indices = @transform_1, window_bounds = array<i64: 32, 4>}, {pipeline_mode = #tpu.pipeline_mode<synchronous>, transform_indices = @transform_2, window_bounds = array<i64: 32, 1>}, {pipeline_mode = #tpu.pipeline_mode<synchronous>, transform_indices = @transform_3, window_bounds = array<i64: 32, 32>}, {pipeline_mode = #tpu.pipeline_mode<synchronous>, transform_indices = @transform_4, window_bounds = array<i64: 32, 1>}, {pipeline_mode = #tpu.pipeline_mode<synchronous>, transform_indices = @transform_5, window_bounds = array<i64: 32, 32>}, {pipeline_mode = #tpu.pipeline_mode<synchronous>, transform_indices = @transform_6, window_bounds = array<i64: 32, 1>}, {pipeline_mode = #tpu.pipeline_mode<synchronous>, transform_indices = @transform_7, window_bounds = array<i64: 32, 32>}, {pipeline_mode = #tpu.pipeline_mode<synchronous>, transform_indices = @transform_8, window_bounds = array<i64: 32, 1>}, {pipeline_mode = #tpu.pipeline_mode<synchronous>, transform_indices = @transform_9, window_bounds = array<i64: 32, 32>}, {pipeline_mode = #tpu.pipeline_mode<synchronous>, transform_indices = @transform_10, window_bounds = array<i64: 32, 1>}, {pipeline_mode = #tpu.pipeline_mode<synchronous>, transform_indices = @transform_11, window_bounds = array<i64: 32, 32>}, {pipeline_mode = #tpu.pipeline_mode<synchronous>, transform_indices = @transform_12, window_bounds = array<i64: 32, 1>}, {pipeline_mode = #tpu.pipeline_mode<synchronous>, transform_indices = @transform_13, window_bounds = array<i64: 3, 32>}, {pipeline_mode = #tpu.pipeline_mode<synchronous>, transform_indices = @transform_14, window_bounds = array<i64: 3, 1>}, {transform_indices = @transform_15, window_bounds = array<i64: 1, 3, 16>}]} {
    %c0 = arith.constant 0 : index
    %c0_0 = arith.constant 0 : index
    %c0_1 = arith.constant 0 : index
    %0 = vector.load %arg2[%c0, %c0_0, %c0_1] : memref<1x4x16xf32, #tpu.memory_space<vmem>>, vector<1x4x16xf32>
    %1 = vector.shape_cast %0 : vector<1x4x16xf32> to vector<4x16xf32>
    %c0_2 = arith.constant 0 : index
    %c0_3 = arith.constant 0 : index
    %2 = vector.load %arg3[%c0_2, %c0_3] : memref<32x4xf32, #tpu.memory_space<vmem>>, vector<32x4xf32>
    %c0_4 = arith.constant 0 : index
    %c0_5 = arith.constant 0 : index
    %3 = vector.load %arg4[%c0_4, %c0_5] : memref<32x1xf32, #tpu.memory_space<vmem>>, vector<32x1xf32>
    %4 = vector.extract_strided_slice %2 {offsets = [0, 0], sizes = [32, 1], strides = [1, 1]} : vector<32x4xf32> to vector<32x1xf32>
    %5 = vector.extract_strided_slice %1 {offsets = [0, 0], sizes = [1, 16], strides = [1, 1]} : vector<4x16xf32> to vector<1x16xf32>
    %6 = vector.broadcast %4 : vector<32x1xf32> to vector<32x16xf32>
    %7 = vector.broadcast %5 : vector<1x16xf32> to vector<32x16xf32>
    %8 = arith.mulf %6, %7 : vector<32x16xf32>
    %9 = vector.extract_strided_slice %2 {offsets = [0, 1], sizes = [32, 1], strides = [1, 1]} : vector<32x4xf32> to vector<32x1xf32>
    %10 = vector.extract_strided_slice %1 {offsets = [1, 0], sizes = [1, 16], strides = [1, 1]} : vector<4x16xf32> to vector<1x16xf32>
    %11 = vector.broadcast %9 : vector<32x1xf32> to vector<32x16xf32>
    %12 = vector.broadcast %10 : vector<1x16xf32> to vector<32x16xf32>
    %13 = arith.mulf %11, %12 : vector<32x16xf32>
    %14 = arith.addf %8, %13 : vector<32x16xf32>
    %15 = vector.extract_strided_slice %2 {offsets = [0, 2], sizes = [32, 1], strides = [1, 1]} : vector<32x4xf32> to vector<32x1xf32>
    %16 = vector.extract_strided_slice %1 {offsets = [2, 0], sizes = [1, 16], strides = [1, 1]} : vector<4x16xf32> to vector<1x16xf32>
    %17 = vector.broadcast %15 : vector<32x1xf32> to vector<32x16xf32>
    %18 = vector.broadcast %16 : vector<1x16xf32> to vector<32x16xf32>
    %19 = arith.mulf %17, %18 : vector<32x16xf32>
    %20 = arith.addf %14, %19 : vector<32x16xf32>
    %21 = vector.extract_strided_slice %2 {offsets = [0, 3], sizes = [32, 1], strides = [1, 1]} : vector<32x4xf32> to vector<32x1xf32>
    %22 = vector.extract_strided_slice %1 {offsets = [3, 0], sizes = [1, 16], strides = [1, 1]} : vector<4x16xf32> to vector<1x16xf32>
    %23 = vector.broadcast %21 : vector<32x1xf32> to vector<32x16xf32>
    %24 = vector.broadcast %22 : vector<1x16xf32> to vector<32x16xf32>
    %25 = arith.mulf %23, %24 : vector<32x16xf32>
    %26 = arith.addf %20, %25 : vector<32x16xf32>
    %27 = vector.broadcast %3 : vector<32x1xf32> to vector<32x16xf32>
    %28 = arith.addf %26, %27 : vector<32x16xf32>
    %cst = arith.constant 0.000000e+00 : f32
    %29 = vector.broadcast %cst : f32 to vector<32x16xf32>
    %30 = arith.maximumf %28, %29 : vector<32x16xf32>
    %31 = math.absf %28 : vector<32x16xf32>
    %cst_6 = arith.constant 0.000000e+00 : f32
    %32 = vector.broadcast %cst_6 : f32 to vector<32x16xf32>
    %33 = arith.subf %32, %31 : vector<32x16xf32>
    %34 = math.exp %33 : vector<32x16xf32>
    %35 = math.log1p %34 : vector<32x16xf32>
    %36 = arith.addf %30, %35 : vector<32x16xf32>
    %c0_7 = arith.constant 0 : index
    %c0_8 = arith.constant 0 : index
    %37 = vector.load %arg5[%c0_7, %c0_8] : memref<32x32xf32, #tpu.memory_space<vmem>>, vector<32x32xf32>
    %c0_9 = arith.constant 0 : index
    %c0_10 = arith.constant 0 : index
    %38 = vector.load %arg6[%c0_9, %c0_10] : memref<32x1xf32, #tpu.memory_space<vmem>>, vector<32x1xf32>
    %cst_11 = arith.constant dense<0.000000e+00> : vector<32x16xf32>
    %39 = tpu.matmul %37, %36, %cst_11 {dimension_numbers = #tpu.dot_dimension_numbers<[1], [0], [0], [1], [0, 0, 1, 1], [], []>} : vector<32x32xf32>, vector<32x16xf32>, vector<32x16xf32> -> vector<32x16xf32>
    %40 = vector.broadcast %38 : vector<32x1xf32> to vector<32x16xf32>
    %41 = arith.addf %39, %40 : vector<32x16xf32>
    %cst_12 = arith.constant 0.000000e+00 : f32
    %42 = vector.broadcast %cst_12 : f32 to vector<32x16xf32>
    %43 = arith.maximumf %41, %42 : vector<32x16xf32>
    %44 = math.absf %41 : vector<32x16xf32>
    %cst_13 = arith.constant 0.000000e+00 : f32
    %45 = vector.broadcast %cst_13 : f32 to vector<32x16xf32>
    %46 = arith.subf %45, %44 : vector<32x16xf32>
    %47 = math.exp %46 : vector<32x16xf32>
    %48 = math.log1p %47 : vector<32x16xf32>
    %49 = arith.addf %43, %48 : vector<32x16xf32>
    %c0_14 = arith.constant 0 : index
    %c0_15 = arith.constant 0 : index
    %50 = vector.load %arg7[%c0_14, %c0_15] : memref<32x32xf32, #tpu.memory_space<vmem>>, vector<32x32xf32>
    %c0_16 = arith.constant 0 : index
    %c0_17 = arith.constant 0 : index
    %51 = vector.load %arg8[%c0_16, %c0_17] : memref<32x1xf32, #tpu.memory_space<vmem>>, vector<32x1xf32>
    %cst_18 = arith.constant dense<0.000000e+00> : vector<32x16xf32>
    %52 = tpu.matmul %50, %49, %cst_18 {dimension_numbers = #tpu.dot_dimension_numbers<[1], [0], [0], [1], [0, 0, 1, 1], [], []>} : vector<32x32xf32>, vector<32x16xf32>, vector<32x16xf32> -> vector<32x16xf32>
    %53 = vector.broadcast %51 : vector<32x1xf32> to vector<32x16xf32>
    %54 = arith.addf %52, %53 : vector<32x16xf32>
    %cst_19 = arith.constant 0.000000e+00 : f32
    %55 = vector.broadcast %cst_19 : f32 to vector<32x16xf32>
    %56 = arith.maximumf %54, %55 : vector<32x16xf32>
    %57 = math.absf %54 : vector<32x16xf32>
    %cst_20 = arith.constant 0.000000e+00 : f32
    %58 = vector.broadcast %cst_20 : f32 to vector<32x16xf32>
    %59 = arith.subf %58, %57 : vector<32x16xf32>
    %60 = math.exp %59 : vector<32x16xf32>
    %61 = math.log1p %60 : vector<32x16xf32>
    %62 = arith.addf %56, %61 : vector<32x16xf32>
    %c0_21 = arith.constant 0 : index
    %c0_22 = arith.constant 0 : index
    %63 = vector.load %arg9[%c0_21, %c0_22] : memref<32x32xf32, #tpu.memory_space<vmem>>, vector<32x32xf32>
    %c0_23 = arith.constant 0 : index
    %c0_24 = arith.constant 0 : index
    %64 = vector.load %arg10[%c0_23, %c0_24] : memref<32x1xf32, #tpu.memory_space<vmem>>, vector<32x1xf32>
    %cst_25 = arith.constant dense<0.000000e+00> : vector<32x16xf32>
    %65 = tpu.matmul %63, %62, %cst_25 {dimension_numbers = #tpu.dot_dimension_numbers<[1], [0], [0], [1], [0, 0, 1, 1], [], []>} : vector<32x32xf32>, vector<32x16xf32>, vector<32x16xf32> -> vector<32x16xf32>
    %66 = vector.broadcast %64 : vector<32x1xf32> to vector<32x16xf32>
    %67 = arith.addf %65, %66 : vector<32x16xf32>
    %cst_26 = arith.constant 0.000000e+00 : f32
    %68 = vector.broadcast %cst_26 : f32 to vector<32x16xf32>
    %69 = arith.maximumf %67, %68 : vector<32x16xf32>
    %70 = math.absf %67 : vector<32x16xf32>
    %cst_27 = arith.constant 0.000000e+00 : f32
    %71 = vector.broadcast %cst_27 : f32 to vector<32x16xf32>
    %72 = arith.subf %71, %70 : vector<32x16xf32>
    %73 = math.exp %72 : vector<32x16xf32>
    %74 = math.log1p %73 : vector<32x16xf32>
    %75 = arith.addf %69, %74 : vector<32x16xf32>
    %c0_28 = arith.constant 0 : index
    %c0_29 = arith.constant 0 : index
    %76 = vector.load %arg11[%c0_28, %c0_29] : memref<32x32xf32, #tpu.memory_space<vmem>>, vector<32x32xf32>
    %c0_30 = arith.constant 0 : index
    %c0_31 = arith.constant 0 : index
    %77 = vector.load %arg12[%c0_30, %c0_31] : memref<32x1xf32, #tpu.memory_space<vmem>>, vector<32x1xf32>
    %cst_32 = arith.constant dense<0.000000e+00> : vector<32x16xf32>
    %78 = tpu.matmul %76, %75, %cst_32 {dimension_numbers = #tpu.dot_dimension_numbers<[1], [0], [0], [1], [0, 0, 1, 1], [], []>} : vector<32x32xf32>, vector<32x16xf32>, vector<32x16xf32> -> vector<32x16xf32>
    %79 = vector.broadcast %77 : vector<32x1xf32> to vector<32x16xf32>
    %80 = arith.addf %78, %79 : vector<32x16xf32>
    %cst_33 = arith.constant 0.000000e+00 : f32
    %81 = vector.broadcast %cst_33 : f32 to vector<32x16xf32>
    %82 = arith.maximumf %80, %81 : vector<32x16xf32>
    %83 = math.absf %80 : vector<32x16xf32>
    %cst_34 = arith.constant 0.000000e+00 : f32
    %84 = vector.broadcast %cst_34 : f32 to vector<32x16xf32>
    %85 = arith.subf %84, %83 : vector<32x16xf32>
    %86 = math.exp %85 : vector<32x16xf32>
    %87 = math.log1p %86 : vector<32x16xf32>
    %88 = arith.addf %82, %87 : vector<32x16xf32>
    %c0_35 = arith.constant 0 : index
    %c0_36 = arith.constant 0 : index
    %89 = vector.load %arg13[%c0_35, %c0_36] : memref<32x32xf32, #tpu.memory_space<vmem>>, vector<32x32xf32>
    %c0_37 = arith.constant 0 : index
    %c0_38 = arith.constant 0 : index
    %90 = vector.load %arg14[%c0_37, %c0_38] : memref<32x1xf32, #tpu.memory_space<vmem>>, vector<32x1xf32>
    %cst_39 = arith.constant dense<0.000000e+00> : vector<32x16xf32>
    %91 = tpu.matmul %89, %88, %cst_39 {dimension_numbers = #tpu.dot_dimension_numbers<[1], [0], [0], [1], [0, 0, 1, 1], [], []>} : vector<32x32xf32>, vector<32x16xf32>, vector<32x16xf32> -> vector<32x16xf32>
    %92 = vector.broadcast %90 : vector<32x1xf32> to vector<32x16xf32>
    %93 = arith.addf %91, %92 : vector<32x16xf32>
    %cst_40 = arith.constant 0.000000e+00 : f32
    %94 = vector.broadcast %cst_40 : f32 to vector<32x16xf32>
    %95 = arith.maximumf %93, %94 : vector<32x16xf32>
    %96 = math.absf %93 : vector<32x16xf32>
    %cst_41 = arith.constant 0.000000e+00 : f32
    %97 = vector.broadcast %cst_41 : f32 to vector<32x16xf32>
    %98 = arith.subf %97, %96 : vector<32x16xf32>
    %99 = math.exp %98 : vector<32x16xf32>
    %100 = math.log1p %99 : vector<32x16xf32>
    %101 = arith.addf %95, %100 : vector<32x16xf32>
    %c0_42 = arith.constant 0 : index
    %c0_43 = arith.constant 0 : index
    %102 = vector.load %arg15[%c0_42, %c0_43] : memref<3x32xf32, #tpu.memory_space<vmem>>, vector<3x32xf32>
    %c0_44 = arith.constant 0 : index
    %c0_45 = arith.constant 0 : index
    %103 = vector.load %arg16[%c0_44, %c0_45] : memref<3x1xf32, #tpu.memory_space<vmem>>, vector<3x1xf32>
    %cst_46 = arith.constant dense<0.000000e+00> : vector<3x16xf32>
    %104 = tpu.matmul %102, %101, %cst_46 {dimension_numbers = #tpu.dot_dimension_numbers<[1], [0], [0], [1], [0, 0, 1, 1], [], []>} : vector<3x32xf32>, vector<32x16xf32>, vector<3x16xf32> -> vector<3x16xf32>
    %105 = vector.broadcast %103 : vector<3x1xf32> to vector<3x16xf32>
    %106 = arith.addf %104, %105 : vector<3x16xf32>
    %c0_47 = arith.constant 0 : index
    %c0_48 = arith.constant 0 : index
    %c0_49 = arith.constant 0 : index
    %107 = vector.load %arg17[%c0_47, %c0_48, %c0_49] : memref<1x3x16xf32, #tpu.memory_space<vmem>>, vector<1x3x16xf32>
    %108 = vector.shape_cast %107 : vector<1x3x16xf32> to vector<3x16xf32>
    %109 = vector.shape_cast %106 : vector<3x16xf32> to vector<1x3x16xf32>
    tpu.vector_store %arg17[%c0_47, %c0_48, %c0_49], %109 {strides = array<i32>} : memref<1x3x16xf32, #tpu.memory_space<vmem>>, vector<1x3x16xf32>,
    return
  }
  func.func @transform_0(%arg0: i32, %arg1: i32) -> (i32, i32, i32) {
    %c0_i32 = arith.constant 0 : i32
    %c0_i32_0 = arith.constant 0 : i32
    return %arg0, %c0_i32, %arg1 : i32, i32, i32
  }
  func.func @transform_1(%arg0: i32, %arg1: i32) -> (i32, i32) {
    %c0_i32 = arith.constant 0 : i32
    %c0_i32_0 = arith.constant 0 : i32
    %c0_i32_1 = arith.constant 0 : i32
    return %c0_i32, %c0_i32_0 : i32, i32
  }
  func.func @transform_2(%arg0: i32, %arg1: i32) -> (i32, i32) {
    %c0_i32 = arith.constant 0 : i32
    %c0_i32_0 = arith.constant 0 : i32
    %c0_i32_1 = arith.constant 0 : i32
    return %c0_i32, %c0_i32_0 : i32, i32
  }
  func.func @transform_3(%arg0: i32, %arg1: i32) -> (i32, i32) {
    %c0_i32 = arith.constant 0 : i32
    %c0_i32_0 = arith.constant 0 : i32
    %c0_i32_1 = arith.constant 0 : i32
    return %c0_i32, %c0_i32_0 : i32, i32
  }
  func.func @transform_4(%arg0: i32, %arg1: i32) -> (i32, i32) {
    %c0_i32 = arith.constant 0 : i32
    %c0_i32_0 = arith.constant 0 : i32
    %c0_i32_1 = arith.constant 0 : i32
    return %c0_i32, %c0_i32_0 : i32, i32
  }
  func.func @transform_5(%arg0: i32, %arg1: i32) -> (i32, i32) {
    %c0_i32 = arith.constant 0 : i32
    %c0_i32_0 = arith.constant 0 : i32
    %c0_i32_1 = arith.constant 0 : i32
    return %c0_i32, %c0_i32_0 : i32, i32
  }
  func.func @transform_6(%arg0: i32, %arg1: i32) -> (i32, i32) {
    %c0_i32 = arith.constant 0 : i32
    %c0_i32_0 = arith.constant 0 : i32
    %c0_i32_1 = arith.constant 0 : i32
    return %c0_i32, %c0_i32_0 : i32, i32
  }
  func.func @transform_7(%arg0: i32, %arg1: i32) -> (i32, i32) {
    %c0_i32 = arith.constant 0 : i32
    %c0_i32_0 = arith.constant 0 : i32
    %c0_i32_1 = arith.constant 0 : i32
    return %c0_i32, %c0_i32_0 : i32, i32
  }
  func.func @transform_8(%arg0: i32, %arg1: i32) -> (i32, i32) {
    %c0_i32 = arith.constant 0 : i32
    %c0_i32_0 = arith.constant 0 : i32
    %c0_i32_1 = arith.constant 0 : i32
    return %c0_i32, %c0_i32_0 : i32, i32
  }
  func.func @transform_9(%arg0: i32, %arg1: i32) -> (i32, i32) {
    %c0_i32 = arith.constant 0 : i32
    %c0_i32_0 = arith.constant 0 : i32
    %c0_i32_1 = arith.constant 0 : i32
    return %c0_i32, %c0_i32_0 : i32, i32
  }
  func.func @transform_10(%arg0: i32, %arg1: i32) -> (i32, i32) {
    %c0_i32 = arith.constant 0 : i32
    %c0_i32_0 = arith.constant 0 : i32
    %c0_i32_1 = arith.constant 0 : i32
    return %c0_i32, %c0_i32_0 : i32, i32
  }
  func.func @transform_11(%arg0: i32, %arg1: i32) -> (i32, i32) {
    %c0_i32 = arith.constant 0 : i32
    %c0_i32_0 = arith.constant 0 : i32
    %c0_i32_1 = arith.constant 0 : i32
    return %c0_i32, %c0_i32_0 : i32, i32
  }
  func.func @transform_12(%arg0: i32, %arg1: i32) -> (i32, i32) {
    %c0_i32 = arith.constant 0 : i32
    %c0_i32_0 = arith.constant 0 : i32
    %c0_i32_1 = arith.constant 0 : i32
    return %c0_i32, %c0_i32_0 : i32, i32
  }
  func.func @transform_13(%arg0: i32, %arg1: i32) -> (i32, i32) {
    %c0_i32 = arith.constant 0 : i32
    %c0_i32_0 = arith.constant 0 : i32
    %c0_i32_1 = arith.constant 0 : i32
    return %c0_i32, %c0_i32_0 : i32, i32
  }
  func.func @transform_14(%arg0: i32, %arg1: i32) -> (i32, i32) {
    %c0_i32 = arith.constant 0 : i32
    %c0_i32_0 = arith.constant 0 : i32
    %c0_i32_1 = arith.constant 0 : i32
    return %c0_i32, %c0_i32_0 : i32, i32
  }
  func.func @transform_15(%arg0: i32, %arg1: i32) -> (i32, i32, i32) {
    %c0_i32 = arith.constant 0 : i32
    %c0_i32_0 = arith.constant 0 : i32
    return %arg0, %c0_i32, %arg1 : i32, i32, i32
  }
}

</mosaic_0001>

<bundles_post_ra>
// kernel: cnn_zt_forward.1
= control target key start
LH: loop header
LB: loop body
LE: loop exit
PB: predicated region body
PF: predicated region fallthrough
CT: control target
= control target key end

     0   :  { %s1753_s18 = smov 0   ;;  %s1755_s19 = smov 0   ;;  %s2054_s0 = inlined_call_operand.vmem [shape: f32[2,4,16], index: 0, kind: input, shape index: {}]   ;;  %s2055_s1 = inlined_call_operand.vmem [shape: f32[32,4], index: 1, kind: input, shape index: {}]   ;;  %s2056_s2 = inlined_call_operand.vmem [shape: f32[32,1], index: 2, kind: input, shape index: {}]   ;;  %s2057_s3 = inlined_call_operand.vmem [shape: f32[32,32], index: 3, kind: input, shape index: {}]   ;;  %s2058_s4 = inlined_call_operand.vmem [shape: f32[32,1], index: 4, kind: input, shape index: {}]   ;;  %s2059_s5 = inlined_call_operand.vmem [shape: f32[32,32], index: 5, kind: input, shape index: {}]   ;;  %s2060_s6 = inlined_call_operand.vmem [shape: f32[32,1], index: 6, kind: input, shape index: {}]   ;;  %s2061_s7 = inlined_call_operand.vmem [shape: f32[32,32], index: 7, kind: input, shape index: {}]   ;;  %s2062_s8 = inlined_call_operand.vmem [shape: f32[32,1], index: 8, kind: input, shape index: {}]   ;;  %s2063_s9 = inlined_call_operand.vmem [shape: f32[32,32], index: 9, kind: input, shape index: {}]   ;;  %s2064_s10 = inlined_call_operand.vmem [shape: f32[32,1], index: 10, kind: input, shape index: {}]   ;;  %s2065_s11 = inlined_call_operand.vmem [shape: f32[32,32], index: 11, kind: input, shape index: {}]   ;;  %s2066_s12 = inlined_call_operand.vmem [shape: f32[32,1], index: 12, kind: input, shape index: {}]   ;;  %s2067_s13 = inlined_call_operand.vmem [shape: f32[3,32], index: 13, kind: input, shape index: {}]   ;;  %s2068_s14 = inlined_call_operand.vmem [shape: f32[3,1], index: 14, kind: input, shape index: {}]   ;;  %s2069_s15 = inlined_call_operand.vmem [shape: f32[2,3,16], index: 15, kind: output, shape index: {}]  }
   0x1   :  { %s1757_s20 = smov 0  }
   0x2 LB: > { %s37_s21 = sadd.s32 1, %s1663_s19  ;;  %p1470_p0 = scmp.ge.s32.totalorder %s1667_s20, 1  ;;  %s1667_s20 = sphi %s1757_s20, %s25_s20   ;;  %s1663_s19 = sphi %s1755_s19, %s2071_s19   ;;  %s1659_s18 = sphi %s1753_s18, %s2070_s18  }
   0x3   : > { %p39_p1 = scmp.ge.s32.totalorder %s37_s21, 2  ;;  %p455_p2 = scmp.lt.s32.totalorder %s1667_s20, 3 }
   0x5   : > { %s2073_s21 = smov (%p39_p1, %s37_s21), 0  ;;  %p456_p3 = pnand %p1470_p0, %p455_p2 }
   0x6   : > { %p507_p4 = scmp.lt.s32.totalorder (!%p456_p3), %s1659_s18, 1 }
   0x7   : > { %459 = sbr.rel (%p456_p3) target bundleno = 1281 (0x501), region = 80 }
   0xc   : > { %v525_v0 = vld [vmem:[%s2055_s1 + $0x18] sm:$0xff]  ;;  %v524_v1 = vld [vmem:[%s2055_s1 + $0x10] sm:$0xff]  ;;  %v1669_v2 = vmov 2   ;;  %v1670_v3 = vmov 0   ;;  %v523_v4 = vld [vmem:[%s2055_s1 + $0x8] sm:$0xff]  ;;  %v1671_v5 = vmov 1  }
   0xd   : > { %1536 = vset.pattern.permute.xlu2 %v1669_v2  ;;  %1534 = vset.pattern.permute.xlu1 %v1670_v3  ;;  %v1672_v6 = vmov 3   ;;  %v522_v7 = vld [vmem:[%s2055_s1] sm:$0xff]  ;;  %v527_v8 = vld [vmem:[%s2056_s2 + $0x8] sm:$0xff]  ;;  %v529_v10 = vld [vmem:[%s2056_s2 + $0x18] sm:$0xff]  ;;  %s2075_s18 = smov (!%p507_p4, %s1659_s18), 1  ;;  %vm742_vm4 = vcmask 261120  }
   0xe   : > { %1532 = vset.pattern.permute.xlu0 %v1670_v3  ;;  %593 = vperm.xlu2 %1536, %v525_v0   ;;  %v718_v9 = vld [vmem:[%s2058_s4] sm:$0xff]  ;;  %v849_v11 = vld [vmem:[%s2060_s6 + $0x8] sm:$0xff]  ;;  %v528_v12 = vld [vmem:[%s2056_s2 + $0x10] sm:$0xff]  ;;  %s1471_s17 = sshll.u32 %s2075_s18, 2 }
   0xf   : > { %547 = vperm.xlu0 %1532, %v525_v0   ;;  %542 = vperm.xlu1 %1534, %v524_v1   ;;  %v979_v13 = vld [vmem:[%s2062_s8 + $0x10] sm:$0xff]  ;;  %v526_v14 = vld [vmem:[%s2056_s2] sm:$0xff]  ;;  %v721_v15 = vld [vmem:[%s2058_s4 + $0x18] sm:$0xff]  ;;  %s513_s28 = scalar_lea.vmem %s2054_s0, %s1471_s17  ;;  %s520_s23 = scalar_lea.vmem %s2069_s15, %s1471_s17 }
  0x10   : > { %v1109_v16 = vld [vmem:[%s2064_s10 + $0x18] sm:$0xff]  ;;  %v720_v17 = vld [vmem:[%s2058_s4 + $0x10] sm:$0xff]  ;;  %v719_v18 = vld [vmem:[%s2058_s4 + $0x8] sm:$0xff] }
  0x11   : > { %v1106_v19 = vld [vmem:[%s2064_s10] sm:$0xff]  ;;  %v851_v20 = vld [vmem:[%s2060_s6 + $0x18] sm:$0xff]  ;;  %v850_v21 = vld [vmem:[%s2060_s6 + $0x10] sm:$0xff] }
  0x12   : > { %v1236_v22 = vld [vmem:[%s2066_s12 + $0x8] sm:$0xff]  ;;  %v848_v23 = vld [vmem:[%s2060_s6] sm:$0xff]  ;;  %v980_v24 = vld [vmem:[%s2062_s8 + $0x18] sm:$0xff] }
  0x13   : > { %v978_v25 = vld [vmem:[%s2062_s8 + $0x8] sm:$0xff]  ;;  %v977_v27 = vld [vmem:[%s2062_s8] sm:$0xff]  ;;  %v1108_v28 = vld [vmem:[%s2064_s10 + $0x10] sm:$0xff] }
  0x14   : > { %v1107_v29 = vld [vmem:[%s2064_s10 + $0x8] sm:$0xff]  ;;  %v1238_v31 = vld [vmem:[%s2066_s12 + $0x18] sm:$0xff]  ;;  %v1237_v32 = vld [vmem:[%s2066_s12 + $0x10] sm:$0xff] }
  0x15   : > { %v1235_v36 = vld [vmem:[%s2066_s12] sm:$0xff] }
  0x16   : > { %1537 = vset.pattern.permute.xlu2 %v1670_v3  ;;  %v1361_v37 = vld [vmem:[%s2068_s14] sm:$0x7] }
  0x17   : > { %1533 = vset.pattern.permute.xlu0 %v1671_v5  ;;  %1535 = vset.pattern.permute.xlu1 %v1671_v5  ;;  %v521_v39 = vld [vmem:[%s513_s28] sm:$0xf] }
  0x18   : > { %568 = vperm.xlu0 %1533, %v525_v0   ;;  %564 = vperm.xlu1 %1535, %v524_v1   ;;  %v1874_v40 = vperm.slane %v521_v39, 1  ;;  %v1876_v41 = vperm.slane %v521_v39, 0  ;;  %v1880_v46 = vperm.slane %v521_v39, 2  ;;  %v1884_v51 = vperm.slane %v521_v39, 3 }
  0x19   : > { %537 = vperm.xlu2 %1537, %v523_v4  }
  0x20   : > { %1539 = vset.pattern.permute.xlu0 %v1672_v6  ;;  %560 = vperm.xlu1 %1535, %v523_v4  }
  0x21   : > { %1538 = vset.pattern.permute.xlu2 %v1669_v2  ;;  %618 = vperm.xlu0 %1539, %v525_v0  }
  0x22   : > { %589 = vperm.xlu2 %1538, %v524_v1  }
  0x28   : > { %1540 = vset.pattern.permute.xlu1 %v1670_v3 }
  0x29   : > { %1544 = vset.pattern.permute.xlu0 %v1669_v2  ;;  %532 = vperm.xlu1 %1540, %v522_v7  }
  0x2a   : > { %1541 = vset.pattern.permute.xlu2 %v1671_v5  ;;  %581 = vperm.xlu0 %1544, %v522_v7  }
  0x2b   : > { %556 = vperm.xlu2 %1541, %v522_v7  }
  0x31   : > { %1542 = vset.pattern.permute.xlu1 %v1669_v2 }
  0x32   : > { %1547 = vset.pattern.permute.xlu0 %v1670_v3  ;;  %585 = vperm.xlu1 %1542, %v523_v4  }
  0x33   : > { %1543 = vset.pattern.permute.xlu2 %v1672_v6  ;;  %637 = vperm.xlu0 %1547, %v527_v8  }
  0x34   : > { %614 = vperm.xlu2 %1543, %v524_v1  }
  0x3a   : > { %1545 = vset.pattern.permute.xlu1 %v1672_v6 }
  0x3b   : > { %724 = vperm.xlu0 %1547, %v718_v9   ;;  %610 = vperm.xlu1 %1545, %v523_v4  }
  0x3c   : > { %1546 = vset.pattern.permute.xlu2 %v1670_v3 }
  0x3d   : > { %647 = vperm.xlu2 %1546, %v529_v10  }
  0x43   : > { %859 = vperm.xlu0 %1547, %v849_v11   ;;  %606 = vperm.xlu1 %1545, %v522_v7  }
  0x45   : > { %642 = vperm.xlu2 %1546, %v528_v12  }
  0x4b   : > { %993 = vperm.xlu0 %1547, %v979_v13   ;;  %1548 = vset.pattern.permute.xlu1 %v1670_v3 }
  0x4c   : > { %632 = vperm.xlu1 %1548, %v526_v14  }
  0x4d   : > { %739 = vperm.xlu2 %1546, %v721_v15  }
  0x53   : > { %1127 = vperm.xlu0 %1547, %v1109_v16  }
  0x54   : > { %734 = vperm.xlu1 %1548, %v720_v17  }
  0x55   : > { %729 = vperm.xlu2 %1546, %v719_v18  }
  0x5b   : > { %1112 = vperm.xlu0 %1547, %v1106_v19  }
  0x5c   : > { %869 = vperm.xlu1 %1548, %v851_v20  }
  0x5d   : > { %864 = vperm.xlu2 %1546, %v850_v21  }
  0x63   : > { %1246 = vperm.xlu0 %1547, %v1236_v22  }
  0x64   : > { %854 = vperm.xlu1 %1548, %v848_v23  }
  0x65   : > { %998 = vperm.xlu2 %1546, %v980_v24  }
  0x68   : > { %v594_v26 = vpop.permute.xlu2 %593 }
  0x69   : > { %v600_v49 = vmul.f32 %v1880_v46, %v594_v26 }
  0x6c   : > { %988 = vperm.xlu1 %1548, %v978_v25  }
  0x6d   : > { %983 = vperm.xlu2 %1546, %v977_v27  }
  0x73   : > { %v1848_v30 = vpop.permute.xlu2 %537 }
  0x74   : > { %1122 = vperm.xlu1 %1548, %v1108_v28   ;;  %v552_v16 = vmul.f32 %v1876_v41, %v1848_v30 }
  0x75   : > { %1117 = vperm.xlu2 %1546, %v1107_v29  }
  0x7c   : > { %1256 = vperm.xlu1 %1548, %v1238_v31   ;;  %v590_v33 = vpop.permute.xlu2 %589 }
  0x7d   : > { %1251 = vperm.xlu2 %1546, %v1237_v32   ;;  %v599_v57 = vmul.f32 %v1880_v46, %v590_v33 }
  0x81   : > { %v543_v34 = vpop.permute.xlu1 %542  ;;  %v548_v35 = vpop.permute.xlu0 %547 }
  0x82   : > { %v554_v44 = vmul.f32 %v1876_v41, %v548_v35  ;;  %v553_v54 = vmul.f32 %v1876_v41, %v543_v34 }
  0x84   : > { %1241 = vperm.xlu1 %1548, %v1235_v36  }
  0x85   : > { %1364 = vperm.xlu2 %1546, %v1361_v37   ;;  %v1872_v38 = vpop.permute.xlu2 %556 }
  0x86   : > { %v572_v35 = vmul.f32 %v1874_v40, %v1872_v38 }
  0x8a   : > { %v569_v42 = vpop.permute.xlu0 %568  ;;  %v565_v43 = vpop.permute.xlu1 %564 }
  0x8b   : > { %v575_v45 = vmul.f32 %v1874_v40, %v569_v42  ;;  %v574_v50 = vmul.f32 %v1874_v40, %v565_v43 }
  0x8d   : > { %v579_v48 = vadd.f32 %v575_v45, %v554_v44  ;;  %v578_v58 = vadd.f32 %v574_v50, %v553_v54 }
  0x8e   : > { %v615_v47 = vpop.permute.xlu2 %614 }
  0x8f   : > { %v604_v56 = vadd.f32 %v600_v49, %v579_v48  ;;  %v624_v62 = vmul.f32 %v1884_v51, %v615_v47  ;;  %v603_v0 = vadd.f32 %v599_v57, %v578_v58 }
  0x91   : > { %v628_v4 = vadd.f32 %v624_v62, %v603_v0 }
  0x92   : > { %v561_v52 = vpop.permute.xlu1 %560 }
  0x93   : > { %v619_v53 = vpop.permute.xlu0 %618  ;;  %v573_v14 = vmul.f32 %v1874_v40, %v561_v52 }
  0x94   : > { %v625_v55 = vmul.f32 %v1884_v51, %v619_v53 }
  0x95   : > { %v577_v18 = vadd.f32 %v573_v14, %v552_v16 }
  0x96   : > { %v629_v59 = vadd.f32 %v625_v55, %v604_v56 }
  0x97   : > { %v648_v60 = vpop.permute.xlu2 %647 }
  0x98   : > { %v653_v61 = vadd.f32 %v648_v60, %v629_v59 }
  0x9a   : > { %v661_v63 = vand.u32 2147483647, %v653_v61  ;;  %v657_v32 = vmax.f32 %v653_v61, 0.0 }
  0x9b   : > { %v533_v1 = vpop.permute.xlu1 %532 }
  0x9c   : > { %v665_v2 = vsub.f32 0.0, %v661_v63  ;;  %v582_v12 = vpop.permute.xlu0 %581  ;;  %v551_v36 = vmul.f32 %v1876_v41, %v533_v1 }
  0x9d   : > { %v597_v49 = vmul.f32 %v1880_v46, %v582_v12 }
  0x9e   : > { %v672_v3 = vmul.f32 1.442695, %v665_v2  ;;  %v576_v48 = vadd.f32 %v572_v35, %v551_v36 }
  0x9f   : > { %v643_v5 = vpop.permute.xlu2 %642 }
  0xa0   : > { %1549 = vpow2.f32 %v672_v3  ;;  %v652_v6 = vadd.f32 %v643_v5, %v628_v4  ;;  %v601_v41 = vadd.f32 %v597_v49, %v576_v48 }
  0xa2   : > { %v660_v7 = vand.u32 2147483647, %v652_v6  ;;  %v656_v54 = vmax.f32 %v652_v6, 0.0 }
  0xa4   : > { %v664_v8 = vsub.f32 0.0, %v660_v7  ;;  %v586_v9 = vpop.permute.xlu1 %585 }
  0xa5   : > { %v598_v17 = vmul.f32 %v1880_v46, %v586_v9  ;;  %v638_v33 = vpop.permute.xlu0 %637 }
  0xa6   : > { %v1550_v10 = vpop.eup %1549  ;;  %v670_v11 = vmul.f32 1.442695, %v664_v8 }
  0xa7   : > { %v701_v13 = vadd.f32 1.0, %v1550_v10  ;;  %v704_v15 = vmul.f32 -0.5, %v1550_v10  ;;  %v707_v21 = vand.u32 2147483647, %v1550_v10  ;;  %v602_v23 = vadd.f32 %v598_v17, %v577_v18  ;;  %v714_v18 = vld [vmem:[%s2057_s3] sm:$0xff] }
  0xa8   : > { %1551 = vpow2.f32 %v670_v11 }
  0xa9   : > { %1553 = vlog2.f32 %v701_v13  ;;  %v705_v19 = vadd.f32 1.0, %v704_v15  ;;  %vm708_vm0 = vcmp.lt.f32.partialorder %v707_v21, 0.0004427343  ;;  %v716_v21 = vld [vmem:[%s2057_s3 + $0x10] sm:$0xff] }
  0xab   : > { %v706_v29 = vmul.f32 %v1550_v10, %v705_v19  ;;  %v715_v19 = vld [vmem:[%s2057_s3 + $0x8] sm:$0xff] }
  0xad   : > { %v611_v20 = vpop.permute.xlu1 %610 }
  0xae   : > { %v1552_v22 = vpop.eup %1551  ;;  %v623_v24 = vmul.f32 %v1884_v51, %v611_v20  ;;  %v717_v20 = vld [vmem:[%s2057_s3 + $0x18] sm:$0xff] }
  0xaf   : > { %v1554_v25 = vpop.eup %1553  ;;  %v692_v26 = vadd.f32 1.0, %v1552_v22  ;;  %v695_v31 = vmul.f32 -0.5, %v1552_v22  ;;  %v698_v44 = vand.u32 2147483647, %v1552_v22 }
  0xb0   : > { %v627_v27 = vadd.f32 %v623_v24, %v602_v23  ;;  %v703_v28 = vmul.f32 0.6931472, %v1554_v25  ;;  %v725_v24 = vpop.permute.xlu0 %724 }
  0xb1   : > { %1555 = vlog2.f32 %v692_v26  ;;  %v696_v42 = vadd.f32 1.0, %v695_v31  ;;  %vm699_vm1 = vcmp.lt.f32.partialorder %v698_v44, 0.0004427343 }
  0xb2   : > { %v651_v30 = vadd.f32 %v638_v33, %v627_v27  ;;  %v709_v34 = vsel %vm708_vm0, %v706_v29, %v703_v28 }
  0xb3   : > { %v713_v37 = vadd.f32 %v709_v34, %v657_v32  ;;  %v697_v53 = vmul.f32 %v1552_v22, %v696_v42  ;;  %v740_v22 = vpop.permute.xlu2 %739 }
  0xb4   : > { %v659_v39 = vand.u32 2147483647, %v651_v30  ;;  %v655_v4 = vmax.f32 %v651_v30, 0.0 }
  0xb5   : > { %v607_v43 = vpop.permute.xlu1 %606  ;;  %767 = vmatpush.msra.mxu0 %v713_v37  ;;  %1496 = vmatpush.msra.mxu2 %v713_v37 }
  0xb6   : > { %v663_v45 = vsub.f32 0.0, %v659_v39  ;;  %1497 = vmatpush.msra.mxu3 %v713_v37  ;;  %v622_v38 = vmul.f32 %v1884_v51, %v607_v43 }
  0xb7   : > { %v1556_v47 = vpop.eup %1555 }
  0xb8   : > { %v668_v50 = vmul.f32 1.442695, %v663_v45  ;;  %v694_v52 = vmul.f32 0.6931472, %v1556_v47  ;;  %v626_v56 = vadd.f32 %v622_v38, %v601_v41 }
  0xba   : > { %1557 = vpow2.f32 %v668_v50  ;;  %v700_v40 = vsel %vm699_vm1, %v697_v53, %v694_v52 }
  0xbb   : > { %v712_v55 = vadd.f32 %v700_v40, %v656_v54  ;;  %v730_v26 = vpop.permute.xlu2 %729 }
  0xbd   : > { %768 = vmatpush.msra.mxu0 %v712_v55  ;;  %1498 = vmatpush.msra.mxu2 %v712_v55 }
  0xbe   : > { %1499 = vmatpush.msra.mxu3 %v712_v55  ;;  %v633_v57 = vpop.permute.xlu1 %632 }
  0xbf   : > { %v650_v58 = vadd.f32 %v633_v57, %v626_v56 }
  0xc0   : > { %v1558_v59 = vpop.eup %1557 }
  0xc1   : > { %v658_v60 = vand.u32 2147483647, %v650_v58  ;;  %v683_v46 = vadd.f32 1.0, %v1558_v59  ;;  %v686_v61 = vmul.f32 -0.5, %v1558_v59  ;;  %v689_v51 = vand.u32 2147483647, %v1558_v59 }
  0xc2   : > { %v654_v15 = vmax.f32 %v650_v58, 0.0 }
  0xc3   : > { %v662_v62 = vsub.f32 0.0, %v658_v60  ;;  %1559 = vlog2.f32 %v683_v46  ;;  %v687_v0 = vadd.f32 1.0, %v686_v61  ;;  %vm690_vm2 = vcmp.lt.f32.partialorder %v689_v51, 0.0004427343 }
  0xc5   : > { %v666_v63 = vmul.f32 1.442695, %v662_v62  ;;  %v688_v3 = vmul.f32 %v1558_v59, %v687_v0 }
  0xc6   : > { %v735_v43 = vpop.permute.xlu1 %734 }
  0xc7   : > { %1561 = vpow2.f32 %v666_v63 }
  0xc9   : > { %v1560_v1 = vpop.eup %1559 }
  0xca   : > { %v685_v2 = vmul.f32 0.6931472, %v1560_v1 }
  0xcc   : > { %v691_v5 = vsel %vm690_vm2, %v688_v3, %v685_v2 }
  0xcd   : > { %v1562_v6 = vpop.eup %1561  ;;  %v711_v7 = vadd.f32 %v691_v5, %v655_v4 }
  0xce   : > { %v674_v8 = vadd.f32 1.0, %v1562_v6  ;;  %v677_v9 = vmul.f32 -0.5, %v1562_v6  ;;  %v680_v11 = vand.u32 2147483647, %v1562_v6 }
  0xcf   : > { %769 = vmatpush.msra.mxu0 %v711_v7  ;;  %1500 = vmatpush.msra.mxu2 %v711_v7 }
  0xd0   : > { %1501 = vmatpush.msra.mxu3 %v711_v7  ;;  %1563 = vlog2.f32 %v674_v8  ;;  %v678_v10 = vadd.f32 1.0, %v677_v9  ;;  %vm681_vm3 = vcmp.lt.f32.partialorder %v680_v11, 0.0004427343 }
  0xd2   : > { %v679_v14 = vmul.f32 %v1562_v6, %v678_v10 }
  0xd6   : > { %v1564_v12 = vpop.eup %1563 }
  0xd7   : > { %v676_v13 = vmul.f32 0.6931472, %v1564_v12 }
  0xd9   : > { %v682_v16 = vsel %vm681_vm3, %v679_v14, %v676_v13 }
  0xda   : > { %v710_v17 = vadd.f32 %v682_v16, %v654_v15 }
  0xdc   : > { %770 = vmatpush.msra.mxu0 %v710_v17  ;;  %1502 = vmatpush.msra.mxu2 %v710_v17 }
  0xdd   : > { %1503 = vmatpush.msra.mxu3 %v710_v17  ;;  %1473 = vmatmul.msk.f32.vlgmr.msra.gmra.mxu0 %vm742_vm4, %v714_v18 }
  0xde   : > { %1474 = vmatmul.msk.f32.vlgmr.msra.gmra.mxu2 %vm742_vm4, %v715_v19  ;;  %1476 = vmatmul.msk.f32.vlgmr.msra.gmra.mxu3 %vm742_vm4, %v717_v20 }
  0xe6   : > { %1475 = vmatmul.msk.f32.gmra.mxu2 %vm742_vm4, %v716_v21 }
 0x15a   : > { %v772_v23 = vpop.f32.mrf.mxu0 }
 0x15b   : > { %v1916_v25 = vadd.f32 %v772_v23, %v725_v24 }
 0x15d   : > { %v788_v27 = vand.u32 2147483647, %v1916_v25  ;;  %v784_v23 = vmax.f32 %v1916_v25, 0.0  ;;  %v846_v25 = vld [vmem:[%s2059_s5 + $0x10] sm:$0xff] }
 0x15f   : > { %v792_v33 = vsub.f32 0.0, %v788_v27  ;;  %v844_v27 = vld [vmem:[%s2059_s5] sm:$0xff] }
 0x161   : > { %v775_v28 = vpop.f32.mrf.mxu2  ;;  %v781_v29 = vpop.f32.mrf.mxu3  ;;  %v796_v37 = vmul.f32 1.442695, %v792_v33 }
 0x162   : > { %v1919_v31 = vadd.f32 %v775_v28, %v730_v26  ;;  %v782_v32 = vadd.f32 %v781_v29, %v740_v22  ;;  %v845_v28 = vld [vmem:[%s2059_s5 + $0x8] sm:$0xff]  ;;  %v847_v29 = vld [vmem:[%s2059_s5 + $0x18] sm:$0xff] }
 0x164   : > { %v789_v30 = vand.u32 2147483647, %v1919_v31  ;;  %v791_v34 = vand.u32 2147483647, %v782_v32  ;;  %v787_v63 = vmax.f32 %v782_v32, 0.0  ;;  %v785_v20 = vmax.f32 %v1919_v31, 0.0  ;;  %v870_v32 = vpop.permute.xlu1 %869 }
 0x166   : > { %v793_v35 = vsub.f32 0.0, %v789_v30  ;;  %v795_v36 = vsub.f32 0.0, %v791_v34  ;;  %v860_v30 = vpop.permute.xlu0 %859 }
 0x168   : > { %v798_v39 = vmul.f32 1.442695, %v793_v35  ;;  %v802_v42 = vmul.f32 1.442695, %v795_v36 }
 0x169   : > { %v778_v44 = vpop.f32.mrf.mxu2 }
 0x16a   : > { %1565 = vpow2.f32 %v798_v39  ;;  %v779_v45 = vadd.f32 %v778_v44, %v735_v43  ;;  %v865_v39 = vpop.permute.xlu2 %864 }
 0x16b   : > { %1567 = vpow2.f32 %v802_v42 }
 0x16c   : > { %1569 = vpow2.f32 %v796_v37  ;;  %v790_v47 = vand.u32 2147483647, %v779_v45  ;;  %v786_v16 = vmax.f32 %v779_v45, 0.0  ;;  %v855_v34 = vpop.permute.xlu1 %854 }
 0x16e   : > { %v794_v48 = vsub.f32 0.0, %v790_v47 }
 0x170   : > { %v1566_v49 = vpop.eup %1565  ;;  %v800_v50 = vmul.f32 1.442695, %v794_v48 }
 0x171   : > { %v1568_v52 = vpop.eup %1567  ;;  %v813_v40 = vadd.f32 1.0, %v1566_v49  ;;  %v816_v46 = vmul.f32 -0.5, %v1566_v49  ;;  %v819_v7 = vand.u32 2147483647, %v1566_v49 }
 0x172   : > { %v1570_v53 = vpop.eup %1569  ;;  %1571 = vpow2.f32 %v800_v50  ;;  %v831_v54 = vadd.f32 1.0, %v1568_v52  ;;  %v834_v38 = vmul.f32 -0.5, %v1568_v52  ;;  %v837_v57 = vand.u32 2147483647, %v1568_v52 }
 0x173   : > { %v804_v41 = vadd.f32 1.0, %v1570_v53  ;;  %v807_v0 = vmul.f32 -0.5, %v1570_v53  ;;  %v817_v4 = vadd.f32 1.0, %v816_v46  ;;  %v810_v11 = vand.u32 2147483647, %v1570_v53 }
 0x174   : > { %1573 = vlog2.f32 %v831_v54  ;;  %v835_v55 = vadd.f32 1.0, %v834_v38  ;;  %vm838_vm5 = vcmp.lt.f32.partialorder %v837_v57, 0.0004427343  ;;  %vm820_vm7 = vcmp.lt.f32.partialorder %v819_v7, 0.0004427343 }
 0x175   : > { %1575 = vlog2.f32 %v813_v40  ;;  %v808_v9 = vadd.f32 1.0, %v807_v0  ;;  %v818_v14 = vmul.f32 %v1566_v49, %v817_v4  ;;  %vm811_vm8 = vcmp.lt.f32.partialorder %v810_v11, 0.0004427343 }
 0x176   : > { %1577 = vlog2.f32 %v804_v41  ;;  %v836_v62 = vmul.f32 %v1568_v52, %v835_v55 }
 0x177   : > { %v809_v19 = vmul.f32 %v1570_v53, %v808_v9 }
 0x178   : > { %v1572_v56 = vpop.eup %1571 }
 0x179   : > { %v822_v58 = vadd.f32 1.0, %v1572_v56  ;;  %v825_v60 = vmul.f32 -0.5, %v1572_v56  ;;  %v828_v6 = vand.u32 2147483647, %v1572_v56 }
 0x17a   : > { %v1574_v59 = vpop.eup %1573 }
 0x17b   : > { %v833_v61 = vmul.f32 0.6931472, %v1574_v59  ;;  %1579 = vlog2.f32 %v822_v58  ;;  %v1576_v51 = vpop.eup %1575  ;;  %v826_v3 = vadd.f32 1.0, %v825_v60  ;;  %vm829_vm6 = vcmp.lt.f32.partialorder %v828_v6, 0.0004427343 }
 0x17c   : > { %v1578_v5 = vpop.eup %1577  ;;  %v815_v8 = vmul.f32 0.6931472, %v1576_v51 }
 0x17d   : > { %v839_v1 = vsel %vm838_vm5, %v836_v62, %v833_v61  ;;  %v827_v13 = vmul.f32 %v1572_v56, %v826_v3  ;;  %v806_v15 = vmul.f32 0.6931472, %v1578_v5 }
 0x17e   : > { %v843_v2 = vadd.f32 %v839_v1, %v787_v63  ;;  %v821_v18 = vsel %vm820_vm7, %v818_v14, %v815_v8 }
 0x17f   : > { %v812_v22 = vsel %vm811_vm8, %v809_v19, %v806_v15  ;;  %v841_v24 = vadd.f32 %v821_v18, %v785_v20 }
 0x180   : > { %896 = vmatpush.msra.mxu1 %v843_v2  ;;  %v840_v26 = vadd.f32 %v812_v22, %v784_v23 }
 0x181   : > { %v1580_v10 = vpop.eup %1579 }
 0x182   : > { %v824_v12 = vmul.f32 0.6931472, %v1580_v10 }
 0x184   : > { %v830_v17 = vsel %vm829_vm6, %v827_v13, %v824_v12 }
 0x185   : > { %v842_v21 = vadd.f32 %v830_v17, %v786_v16 }
 0x187   : > { %897 = vmatpush.msra.mxu1 %v842_v21 }
 0x189   : > { %898 = vmatpush.msra.mxu1 %v841_v24 }
 0x18b   : > { %899 = vmatpush.msra.mxu1 %v840_v26 }
 0x18c   : > { %1477 = vmatmul.msk.f32.vlgmr.msra.gmra.mxu1 %vm742_vm4, %v844_v27 }
 0x194   : > { %1478 = vmatmul.msk.f32.gmra.mxu1 %vm742_vm4, %v845_v28 }
 0x19c   : > { %1479 = vmatmul.msk.f32.gmra.mxu1 %vm742_vm4, %v846_v25 }
 0x1a4   : > { %1480 = vmatmul.msk.f32.gmra.mxu1 %vm742_vm4, %v847_v29 }
 0x209   : > { %v901_v31 = vpop.f32.mrf.mxu1 }
 0x20a   : > { %v1942_v36 = vadd.f32 %v901_v31, %v855_v34  ;;  %v973_v34 = vld [vmem:[%s2061_s7] sm:$0xff] }
 0x20c   : > { %v917_v42 = vand.u32 2147483647, %v1942_v36 }
 0x20e   : > { %v921_v48 = vsub.f32 0.0, %v917_v42  ;;  %v999_v42 = vpop.permute.xlu2 %998 }
 0x210   : > { %v925_v53 = vmul.f32 1.442695, %v921_v48 }
 0x211   : > { %v904_v33 = vpop.f32.mrf.mxu1 }
 0x212   : > { %v1940_v35 = vadd.f32 %v904_v33, %v860_v30 }
 0x214   : > { %v918_v37 = vand.u32 2147483647, %v1940_v35  ;;  %v914_v25 = vmax.f32 %v1940_v35, 0.0  ;;  %v974_v35 = vld [vmem:[%s2061_s7 + $0x8] sm:$0xff] }
 0x216   : > { %v922_v45 = vsub.f32 0.0, %v918_v37  ;;  %v976_v37 = vld [vmem:[%s2061_s7 + $0x18] sm:$0xff] }
 0x218   : > { %v927_v50 = vmul.f32 1.442695, %v922_v45  ;;  %v984_v45 = vpop.permute.xlu2 %983 }
 0x219   : > { %v907_v43 = vpop.f32.mrf.mxu1 }
 0x21a   : > { %v1946_v44 = vadd.f32 %v907_v43, %v865_v39 }
 0x21c   : > { %v919_v47 = vand.u32 2147483647, %v1946_v44  ;;  %v915_v24 = vmax.f32 %v1946_v44, 0.0  ;;  %v989_v44 = vpop.permute.xlu1 %988 }
 0x21e   : > { %v923_v49 = vsub.f32 0.0, %v919_v47 }
 0x220   : > { %v929_v52 = vmul.f32 1.442695, %v923_v49 }
 0x221   : > { %v910_v54 = vpop.f32.mrf.mxu1 }
 0x222   : > { %1581 = vpow2.f32 %v929_v52  ;;  %v911_v38 = vadd.f32 %v910_v54, %v870_v32  ;;  %v913_v32 = vmax.f32 %v1942_v36, 0.0  ;;  %v975_v36 = vld [vmem:[%s2061_s7 + $0x10] sm:$0xff] }
 0x223   : > { %1583 = vpow2.f32 %v927_v50  ;;  %v994_v50 = vpop.permute.xlu0 %993 }
 0x224   : > { %v920_v40 = vand.u32 2147483647, %v911_v38  ;;  %1585 = vpow2.f32 %v925_v53  ;;  %v916_v19 = vmax.f32 %v911_v38, 0.0 }
 0x226   : > { %v924_v41 = vsub.f32 0.0, %v920_v40 }
 0x228   : > { %v1582_v55 = vpop.eup %1581  ;;  %v931_v56 = vmul.f32 1.442695, %v924_v41 }
 0x229   : > { %v1584_v57 = vpop.eup %1583  ;;  %v951_v59 = vadd.f32 1.0, %v1582_v55  ;;  %v954_v0 = vmul.f32 -0.5, %v1582_v55  ;;  %v957_v7 = vand.u32 2147483647, %v1582_v55 }
 0x22a   : > { %1587 = vpow2.f32 %v931_v56  ;;  %v1586_v58 = vpop.eup %1585  ;;  %v942_v60 = vadd.f32 1.0, %v1584_v57  ;;  %v945_v51 = vmul.f32 -0.5, %v1584_v57  ;;  %v948_v12 = vand.u32 2147483647, %v1584_v57 }
 0x22b   : > { %v933_v46 = vadd.f32 1.0, %v1586_v58  ;;  %1589 = vlog2.f32 %v951_v59  ;;  %v936_v2 = vmul.f32 -0.5, %v1586_v58  ;;  %v955_v4 = vadd.f32 1.0, %v954_v0 }
 0x22c   : > { %1591 = vlog2.f32 %v942_v60  ;;  %v946_v10 = vadd.f32 1.0, %v945_v51  ;;  %v939_v14 = vand.u32 2147483647, %v1586_v58  ;;  %vm958_vm10 = vcmp.lt.f32.partialorder %v957_v7, 0.0004427343 }
 0x22d   : > { %1593 = vlog2.f32 %v933_v46  ;;  %v937_v13 = vadd.f32 1.0, %v936_v2  ;;  %v956_v17 = vmul.f32 %v1582_v55, %v955_v4  ;;  %vm949_vm11 = vcmp.lt.f32.partialorder %v948_v12, 0.0004427343 }
 0x22e   : > { %v947_v22 = vmul.f32 %v1584_v57, %v946_v10  ;;  %vm940_vm12 = vcmp.lt.f32.partialorder %v939_v14, 0.0004427343 }
 0x22f   : > { %v938_v28 = vmul.f32 %v1586_v58, %v937_v13 }
 0x230   : > { %v1588_v61 = vpop.eup %1587 }
 0x231   : > { %v960_v62 = vadd.f32 1.0, %v1588_v61  ;;  %v963_v63 = vmul.f32 -0.5, %v1588_v61  ;;  %v1590_v1 = vpop.eup %1589  ;;  %v966_v6 = vand.u32 2147483647, %v1588_v61 }
 0x232   : > { %v1592_v5 = vpop.eup %1591  ;;  %v953_v9 = vmul.f32 0.6931472, %v1590_v1 }
 0x233   : > { %1595 = vlog2.f32 %v960_v62  ;;  %v964_v3 = vadd.f32 1.0, %v963_v63  ;;  %v1594_v8 = vpop.eup %1593  ;;  %v944_v18 = vmul.f32 0.6931472, %v1592_v5  ;;  %vm967_vm9 = vcmp.lt.f32.partialorder %v966_v6, 0.0004427343 }
 0x234   : > { %v959_v21 = vsel %vm958_vm10, %v956_v17, %v953_v9  ;;  %v935_v23 = vmul.f32 0.6931472, %v1594_v8  ;;  %vm1390_vm10 = vcmask 124928  }
 0x235   : > { %v965_v16 = vmul.f32 %v1588_v61, %v964_v3  ;;  %v950_v27 = vsel %vm949_vm11, %v947_v22, %v944_v18  ;;  %v971_v29 = vadd.f32 %v959_v21, %v915_v24 }
 0x236   : > { %v941_v31 = vsel %vm940_vm12, %v938_v28, %v935_v23  ;;  %v970_v33 = vadd.f32 %v950_v27, %v914_v25 }
 0x237   : > { %v969_v30 = vadd.f32 %v941_v31, %v913_v32 }
 0x239   : > { %v1596_v11 = vpop.eup %1595 }
 0x23a   : > { %v962_v15 = vmul.f32 0.6931472, %v1596_v11 }
 0x23c   : > { %v968_v20 = vsel %vm967_vm9, %v965_v16, %v962_v15 }
 0x23d   : > { %v972_v26 = vadd.f32 %v968_v20, %v916_v19 }
 0x23f   : > { %1025 = vmatpush.msrb.mxu2 %v972_v26 }
 0x241   : > { %1026 = vmatpush.msrb.mxu2 %v971_v29 }
 0x243   : > { %1027 = vmatpush.msrb.mxu2 %v970_v33 }
 0x245   : > { %1028 = vmatpush.msrb.mxu2 %v969_v30 }
 0x246   : > { %1481 = vmatmul.msk.f32.vlgmr.msrb.gmra.mxu2 %vm742_vm4, %v973_v34 }
 0x24e   : > { %1482 = vmatmul.msk.f32.gmra.mxu2 %vm742_vm4, %v974_v35 }
 0x256   : > { %1483 = vmatmul.msk.f32.gmra.mxu2 %vm742_vm4, %v975_v36 }
 0x25e   : > { %1484 = vmatmul.msk.f32.gmra.mxu2 %vm742_vm4, %v976_v37 }
 0x2c9   : > { %v1030_v39 = vpop.f32.mrf.mxu2 }
 0x2ca   : > { %v1970_v48 = vadd.f32 %v1030_v39, %v984_v45  ;;  %v1102_v45 = vld [vmem:[%s2063_s9] sm:$0xff] }
 0x2cc   : > { %v1046_v52 = vand.u32 2147483647, %v1970_v48 }
 0x2ce   : > { %v1050_v41 = vsub.f32 0.0, %v1046_v52  ;;  %v1128_v52 = vpop.permute.xlu0 %1127 }
 0x2d0   : > { %v1054_v58 = vmul.f32 1.442695, %v1050_v41 }
 0x2d1   : > { %v1033_v43 = vpop.f32.mrf.mxu2 }
 0x2d2   : > { %v1968_v47 = vadd.f32 %v1033_v43, %v989_v44 }
 0x2d4   : > { %v1047_v49 = vand.u32 2147483647, %v1968_v47  ;;  %v1043_v36 = vmax.f32 %v1968_v47, 0.0  ;;  %v1103_v47 = vld [vmem:[%s2063_s9 + $0x8] sm:$0xff] }
 0x2d6   : > { %v1051_v38 = vsub.f32 0.0, %v1047_v49  ;;  %v1105_v49 = vld [vmem:[%s2063_s9 + $0x18] sm:$0xff] }
 0x2d8   : > { %v1056_v56 = vmul.f32 1.442695, %v1051_v38  ;;  %v1113_v38 = vpop.permute.xlu0 %1112 }
 0x2d9   : > { %v1036_v53 = vpop.f32.mrf.mxu2 }
 0x2da   : > { %v1974_v54 = vadd.f32 %v1036_v53, %v994_v50 }
 0x2dc   : > { %v1048_v40 = vand.u32 2147483647, %v1974_v54  ;;  %v1044_v33 = vmax.f32 %v1974_v54, 0.0  ;;  %v1118_v54 = vpop.permute.xlu2 %1117 }
 0x2de   : > { %v1052_v55 = vsub.f32 0.0, %v1048_v40 }
 0x2e0   : > { %v1058_v57 = vmul.f32 1.442695, %v1052_v55 }
 0x2e1   : > { %v1039_v59 = vpop.f32.mrf.mxu2 }
 0x2e2   : > { %1597 = vpow2.f32 %v1058_v57  ;;  %v1040_v60 = vadd.f32 %v1039_v59, %v999_v42  ;;  %v1042_v42 = vmax.f32 %v1970_v48, 0.0  ;;  %v1104_v48 = vld [vmem:[%s2063_s9 + $0x10] sm:$0xff] }
 0x2e3   : > { %1599 = vpow2.f32 %v1056_v56  ;;  %v1123_v56 = vpop.permute.xlu1 %1122 }
 0x2e4   : > { %v1049_v46 = vand.u32 2147483647, %v1040_v60  ;;  %1601 = vpow2.f32 %v1054_v58  ;;  %v1045_v28 = vmax.f32 %v1040_v60, 0.0 }
 0x2e6   : > { %v1053_v61 = vsub.f32 0.0, %v1049_v46 }
 0x2e8   : > { %v1598_v62 = vpop.eup %1597  ;;  %v1060_v63 = vmul.f32 1.442695, %v1053_v61 }
 0x2e9   : > { %v1600_v0 = vpop.eup %1599  ;;  %v1080_v1 = vadd.f32 1.0, %v1598_v62  ;;  %v1083_v7 = vmul.f32 -0.5, %v1598_v62  ;;  %v1086_v15 = vand.u32 2147483647, %v1598_v62 }
 0x2ea   : > { %1603 = vpow2.f32 %v1060_v63  ;;  %v1602_v51 = vpop.eup %1601  ;;  %v1071_v2 = vadd.f32 1.0, %v1600_v0  ;;  %v1074_v8 = vmul.f32 -0.5, %v1600_v0  ;;  %v1077_v20 = vand.u32 2147483647, %v1600_v0 }
 0x2eb   : > { %v1062_v3 = vadd.f32 1.0, %v1602_v51  ;;  %1605 = vlog2.f32 %v1080_v1  ;;  %v1065_v10 = vmul.f32 -0.5, %v1602_v51  ;;  %v1084_v12 = vadd.f32 1.0, %v1083_v7 }
 0x2ec   : > { %1607 = vlog2.f32 %v1071_v2  ;;  %v1075_v18 = vadd.f32 1.0, %v1074_v8  ;;  %v1068_v22 = vand.u32 2147483647, %v1602_v51  ;;  %vm1087_vm14 = vcmp.lt.f32.partialorder %v1086_v15, 0.0004427343 }
 0x2ed   : > { %1609 = vlog2.f32 %v1062_v3  ;;  %v1066_v21 = vadd.f32 1.0, %v1065_v10  ;;  %v1085_v26 = vmul.f32 %v1598_v62, %v1084_v12  ;;  %vm1078_vm15 = vcmp.lt.f32.partialorder %v1077_v20, 0.0004427343 }
 0x2ee   : > { %v1076_v31 = vmul.f32 %v1600_v0, %v1075_v18  ;;  %vm1069_vm0 = vcmp.lt.f32.partialorder %v1068_v22, 0.0004427343 }
 0x2ef   : > { %v1067_v35 = vmul.f32 %v1602_v51, %v1066_v21 }
 0x2f0   : > { %v1604_v4 = vpop.eup %1603 }
 0x2f1   : > { %v1089_v5 = vadd.f32 1.0, %v1604_v4  ;;  %v1092_v6 = vmul.f32 -0.5, %v1604_v4  ;;  %v1606_v9 = vpop.eup %1605  ;;  %v1095_v14 = vand.u32 2147483647, %v1604_v4 }
 0x2f2   : > { %v1608_v13 = vpop.eup %1607  ;;  %v1082_v17 = vmul.f32 0.6931472, %v1606_v9 }
 0x2f3   : > { %1611 = vlog2.f32 %v1089_v5  ;;  %v1093_v11 = vadd.f32 1.0, %v1092_v6  ;;  %v1610_v16 = vpop.eup %1609  ;;  %v1073_v27 = vmul.f32 0.6931472, %v1608_v13  ;;  %vm1096_vm13 = vcmp.lt.f32.partialorder %v1095_v14, 0.0004427343 }
 0x2f4   : > { %v1088_v29 = vsel %vm1087_vm14, %v1085_v26, %v1082_v17  ;;  %v1064_v32 = vmul.f32 0.6931472, %v1610_v16 }
 0x2f5   : > { %v1094_v24 = vmul.f32 %v1604_v4, %v1093_v11  ;;  %v1079_v34 = vsel %vm1078_vm15, %v1076_v31, %v1073_v27  ;;  %v1100_v37 = vadd.f32 %v1088_v29, %v1044_v33 }
 0x2f6   : > { %v1070_v39 = vsel %vm1069_vm0, %v1067_v35, %v1064_v32  ;;  %v1099_v43 = vadd.f32 %v1079_v34, %v1043_v36 }
 0x2f7   : > { %v1098_v44 = vadd.f32 %v1070_v39, %v1042_v42 }
 0x2f9   : > { %v1612_v19 = vpop.eup %1611 }
 0x2fa   : > { %v1091_v23 = vmul.f32 0.6931472, %v1612_v19 }
 0x2fc   : > { %v1097_v25 = vsel %vm1096_vm13, %v1094_v24, %v1091_v23 }
 0x2fd   : > { %v1101_v30 = vadd.f32 %v1097_v25, %v1045_v28 }
 0x2ff   : > { %1154 = vmatpush.msrb.mxu3 %v1101_v30 }
 0x301   : > { %1155 = vmatpush.msrb.mxu3 %v1100_v37 }
 0x303   : > { %1156 = vmatpush.msrb.mxu3 %v1099_v43 }
 0x305   : > { %1157 = vmatpush.msrb.mxu3 %v1098_v44 }
 0x306   : > { %1485 = vmatmul.msk.f32.vlgmr.msrb.gmra.mxu3 %vm742_vm4, %v1102_v45 }
 0x30e   : > { %1486 = vmatmul.msk.f32.gmra.mxu3 %vm742_vm4, %v1103_v47 }
 0x316   : > { %1487 = vmatmul.msk.f32.gmra.mxu3 %vm742_vm4, %v1104_v48 }
 0x31e   : > { %1488 = vmatmul.msk.f32.gmra.mxu3 %vm742_vm4, %v1105_v49 }
 0x389   : > { %v1159_v50 = vpop.f32.mrf.mxu3 }
 0x38a   : > { %v1998_v41 = vadd.f32 %v1159_v50, %v1113_v38  ;;  %v1231_v38 = vld [vmem:[%s2065_s11] sm:$0xff] }
 0x38c   : > { %v1175_v57 = vand.u32 2147483647, %v1998_v41 }
 0x38e   : > { %v1179_v61 = vsub.f32 0.0, %v1175_v57  ;;  %v1257_v57 = vpop.permute.xlu1 %1256 }
 0x390   : > { %v1183_v51 = vmul.f32 1.442695, %v1179_v61 }
 0x391   : > { %v1162_v53 = vpop.f32.mrf.mxu3 }
 0x392   : > { %v1996_v40 = vadd.f32 %v1162_v53, %v1118_v54 }
 0x394   : > { %v1176_v55 = vand.u32 2147483647, %v1996_v40  ;;  %v1172_v48 = vmax.f32 %v1996_v40, 0.0  ;;  %v1232_v40 = vld [vmem:[%s2065_s11 + $0x8] sm:$0xff] }
 0x396   : > { %v1180_v60 = vsub.f32 0.0, %v1176_v55  ;;  %v1234_v55 = vld [vmem:[%s2065_s11 + $0x18] sm:$0xff] }
 0x398   : > { %v1185_v63 = vmul.f32 1.442695, %v1180_v60  ;;  %v1242_v60 = vpop.permute.xlu1 %1241 }
 0x399   : > { %v1165_v58 = vpop.f32.mrf.mxu3 }
 0x39a   : > { %v2002_v59 = vadd.f32 %v1165_v58, %v1123_v56 }
 0x39c   : > { %v1177_v46 = vand.u32 2147483647, %v2002_v59  ;;  %v1173_v43 = vmax.f32 %v2002_v59, 0.0  ;;  %v1247_v59 = vpop.permute.xlu0 %1246 }
 0x39e   : > { %v1181_v62 = vsub.f32 0.0, %v1177_v46 }
 0x3a0   : > { %v1187_v0 = vmul.f32 1.442695, %v1181_v62 }
 0x3a1   : > { %v1168_v1 = vpop.f32.mrf.mxu3 }
 0x3a2   : > { %1613 = vpow2.f32 %v1187_v0  ;;  %v1169_v2 = vadd.f32 %v1168_v1, %v1128_v52  ;;  %v1171_v52 = vmax.f32 %v1998_v41, 0.0  ;;  %v1233_v41 = vld [vmem:[%s2065_s11 + $0x10] sm:$0xff] }
 0x3a3   : > { %1615 = vpow2.f32 %v1185_v63  ;;  %v1252_v63 = vpop.permute.xlu2 %1251 }
 0x3a4   : > { %v1178_v3 = vand.u32 2147483647, %v1169_v2  ;;  %1617 = vpow2.f32 %v1183_v51  ;;  %v1174_v35 = vmax.f32 %v1169_v2, 0.0 }
 0x3a6   : > { %v1182_v4 = vsub.f32 0.0, %v1178_v3 }
 0x3a8   : > { %v1614_v5 = vpop.eup %1613  ;;  %v1189_v6 = vmul.f32 1.442695, %v1182_v4 }
 0x3a9   : > { %v1616_v7 = vpop.eup %1615  ;;  %v1209_v9 = vadd.f32 1.0, %v1614_v5  ;;  %v1212_v15 = vmul.f32 -0.5, %v1614_v5  ;;  %v1215_v23 = vand.u32 2147483647, %v1614_v5 }
 0x3aa   : > { %1619 = vpow2.f32 %v1189_v6  ;;  %v1618_v8 = vpop.eup %1617  ;;  %v1200_v10 = vadd.f32 1.0, %v1616_v7  ;;  %v1203_v16 = vmul.f32 -0.5, %v1616_v7  ;;  %v1206_v25 = vand.u32 2147483647, %v1616_v7 }
 0x3ab   : > { %v1191_v11 = vadd.f32 1.0, %v1618_v8  ;;  %1621 = vlog2.f32 %v1209_v9  ;;  %v1194_v18 = vmul.f32 -0.5, %v1618_v8  ;;  %v1213_v20 = vadd.f32 1.0, %v1212_v15 }
 0x3ac   : > { %1623 = vlog2.f32 %v1200_v10  ;;  %v1204_v27 = vadd.f32 1.0, %v1203_v16  ;;  %v1197_v31 = vand.u32 2147483647, %v1618_v8  ;;  %vm1216_vm2 = vcmp.lt.f32.partialorder %v1215_v23, 0.0004427343 }
 0x3ad   : > { %1625 = vlog2.f32 %v1191_v11  ;;  %v1195_v29 = vadd.f32 1.0, %v1194_v18  ;;  %v1214_v30 = vmul.f32 %v1614_v5, %v1213_v20  ;;  %vm1207_vm3 = vcmp.lt.f32.partialorder %v1206_v25, 0.0004427343 }
 0x3ae   : > { %v1205_v39 = vmul.f32 %v1616_v7, %v1204_v27  ;;  %vm1198_vm5 = vcmp.lt.f32.partialorder %v1197_v31, 0.0004427343 }
 0x3af   : > { %v1196_v47 = vmul.f32 %v1618_v8, %v1195_v29 }
 0x3b0   : > { %v1620_v12 = vpop.eup %1619 }
 0x3b1   : > { %v1218_v13 = vadd.f32 1.0, %v1620_v12  ;;  %v1221_v14 = vmul.f32 -0.5, %v1620_v12  ;;  %v1622_v17 = vpop.eup %1621  ;;  %v1224_v22 = vand.u32 2147483647, %v1620_v12 }
 0x3b2   : > { %v1624_v21 = vpop.eup %1623  ;;  %v1211_v26 = vmul.f32 0.6931472, %v1622_v17 }
 0x3b3   : > { %1627 = vlog2.f32 %v1218_v13  ;;  %v1222_v19 = vadd.f32 1.0, %v1221_v14  ;;  %v1626_v24 = vpop.eup %1625  ;;  %v1202_v34 = vmul.f32 0.6931472, %v1624_v21  ;;  %vm1225_vm1 = vcmp.lt.f32.partialorder %v1224_v22, 0.0004427343 }
 0x3b4   : > { %v1217_v37 = vsel %vm1216_vm2, %v1214_v30, %v1211_v26  ;;  %v1193_v42 = vmul.f32 0.6931472, %v1626_v24 }
 0x3b5   : > { %v1223_v33 = vmul.f32 %v1620_v12, %v1222_v19  ;;  %v1208_v45 = vsel %vm1207_vm3, %v1205_v39, %v1202_v34  ;;  %v1229_v49 = vadd.f32 %v1217_v37, %v1173_v43 }
 0x3b6   : > { %v1199_v50 = vsel %vm1198_vm5, %v1196_v47, %v1193_v42  ;;  %v1228_v53 = vadd.f32 %v1208_v45, %v1172_v48 }
 0x3b7   : > { %v1227_v54 = vadd.f32 %v1199_v50, %v1171_v52 }
 0x3b9   : > { %v1628_v28 = vpop.eup %1627 }
 0x3ba   : > { %v1220_v32 = vmul.f32 0.6931472, %v1628_v28 }
 0x3bc   : > { %v1226_v36 = vsel %vm1225_vm1, %v1223_v33, %v1220_v32 }
 0x3bd   : > { %v1230_v44 = vadd.f32 %v1226_v36, %v1174_v35 }
 0x3bf   : > { %1283 = vmatpush.msrb.mxu0 %v1230_v44 }
 0x3c1   : > { %1284 = vmatpush.msrb.mxu0 %v1229_v49 }
 0x3c3   : > { %1285 = vmatpush.msrb.mxu0 %v1228_v53 }
 0x3c5   : > { %1286 = vmatpush.msrb.mxu0 %v1227_v54 }
 0x3c6   : > { %1489 = vmatmul.msk.f32.vlgmr.msrb.gmra.mxu0 %vm742_vm4, %v1231_v38 }
 0x3ce   : > { %1490 = vmatmul.msk.f32.gmra.mxu0 %vm742_vm4, %v1232_v40 }
 0x3d6   : > { %1491 = vmatmul.msk.f32.gmra.mxu0 %vm742_vm4, %v1233_v41 }
 0x3de   : > { %1492 = vmatmul.msk.f32.gmra.mxu0 %vm742_vm4, %v1234_v55 }
 0x443   : > { %v1288_v56 = vpop.f32.mrf.mxu0 }
 0x444   : > { %v2026_v61 = vadd.f32 %v1288_v56, %v1242_v60  ;;  %v1360_v60 = vld [vmem:[%s2067_s13] sm:$0x7] }
 0x446   : > { %v1304_v0 = vand.u32 2147483647, %v2026_v61 }
 0x448   : > { %v1308_v4 = vsub.f32 0.0, %v1304_v0 }
 0x44a   : > { %v1312_v8 = vmul.f32 1.442695, %v1308_v4 }
 0x44b   : > { %v1291_v58 = vpop.f32.mrf.mxu0 }
 0x44c   : > { %v2024_v46 = vadd.f32 %v1291_v58, %v1247_v59 }
 0x44e   : > { %v1305_v62 = vand.u32 2147483647, %v2024_v46  ;;  %v1301_v41 = vmax.f32 %v2024_v46, 0.0 }
 0x450   : > { %v1309_v2 = vsub.f32 0.0, %v1305_v62  ;;  %v1365_v62 = vpop.permute.xlu2 %1364 }
 0x452   : > { %v1314_v6 = vmul.f32 1.442695, %v1309_v2 }
 0x453   : > { %v1294_v51 = vpop.f32.mrf.mxu0 }
 0x454   : > { %v2030_v1 = vadd.f32 %v1294_v51, %v1252_v63 }
 0x456   : > { %v1306_v3 = vand.u32 2147483647, %v2030_v1  ;;  %v1302_v53 = vmax.f32 %v2030_v1, 0.0 }
 0x458   : > { %v1310_v5 = vsub.f32 0.0, %v1306_v3 }
 0x45a   : > { %v1316_v7 = vmul.f32 1.442695, %v1310_v5 }
 0x45b   : > { %v1297_v9 = vpop.f32.mrf.mxu0 }
 0x45c   : > { %1629 = vpow2.f32 %v1316_v7  ;;  %v1298_v10 = vadd.f32 %v1297_v9, %v1257_v57  ;;  %v1300_v57 = vmax.f32 %v2026_v61, 0.0 }
 0x45d   : > { %1631 = vpow2.f32 %v1314_v6 }
 0x45e   : > { %v1307_v11 = vand.u32 2147483647, %v1298_v10  ;;  %1633 = vpow2.f32 %v1312_v8  ;;  %v1303_v47 = vmax.f32 %v1298_v10, 0.0 }
 0x460   : > { %v1311_v12 = vsub.f32 0.0, %v1307_v11 }
 0x462   : > { %v1630_v13 = vpop.eup %1629  ;;  %v1318_v14 = vmul.f32 1.442695, %v1311_v12 }
 0x463   : > { %v1632_v15 = vpop.eup %1631  ;;  %v1338_v17 = vadd.f32 1.0, %v1630_v13  ;;  %v1341_v23 = vmul.f32 -0.5, %v1630_v13  ;;  %v1344_v32 = vand.u32 2147483647, %v1630_v13 }
 0x464   : > { %1635 = vpow2.f32 %v1318_v14  ;;  %v1634_v16 = vpop.eup %1633  ;;  %v1329_v18 = vadd.f32 1.0, %v1632_v15  ;;  %v1332_v24 = vmul.f32 -0.5, %v1632_v15  ;;  %v1335_v36 = vand.u32 2147483647, %v1632_v15 }
 0x465   : > { %v1320_v19 = vadd.f32 1.0, %v1634_v16  ;;  %1637 = vlog2.f32 %v1338_v17  ;;  %v1323_v27 = vmul.f32 -0.5, %v1634_v16  ;;  %v1342_v25 = vadd.f32 1.0, %v1341_v23 }
 0x466   : > { %1639 = vlog2.f32 %v1329_v18  ;;  %v1333_v34 = vadd.f32 1.0, %v1332_v24  ;;  %v1326_v39 = vand.u32 2147483647, %v1634_v16  ;;  %vm1345_vm7 = vcmp.lt.f32.partialorder %v1344_v32, 0.0004427343 }
 0x467   : > { %1641 = vlog2.f32 %v1320_v19  ;;  %v1324_v37 = vadd.f32 1.0, %v1323_v27  ;;  %v1343_v44 = vmul.f32 %v1630_v13, %v1342_v25  ;;  %vm1336_vm8 = vcmp.lt.f32.partialorder %v1335_v36, 0.0004427343 }
 0x468   : > { %v1334_v50 = vmul.f32 %v1632_v15, %v1333_v34  ;;  %vm1327_vm9 = vcmp.lt.f32.partialorder %v1326_v39, 0.0004427343 }
 0x469   : > { %v1325_v40 = vmul.f32 %v1634_v16, %v1324_v37 }
 0x46a   : > { %v1636_v20 = vpop.eup %1635 }
 0x46b   : > { %v1347_v21 = vadd.f32 1.0, %v1636_v20  ;;  %v1350_v22 = vmul.f32 -0.5, %v1636_v20  ;;  %v1638_v26 = vpop.eup %1637  ;;  %v1353_v31 = vand.u32 2147483647, %v1636_v20 }
 0x46c   : > { %v1640_v29 = vpop.eup %1639  ;;  %v1340_v30 = vmul.f32 0.6931472, %v1638_v26 }
 0x46d   : > { %1643 = vlog2.f32 %v1347_v21  ;;  %v1351_v28 = vadd.f32 1.0, %v1350_v22  ;;  %v1642_v33 = vpop.eup %1641  ;;  %v1331_v45 = vmul.f32 0.6931472, %v1640_v29  ;;  %vm1354_vm6 = vcmp.lt.f32.partialorder %v1353_v31, 0.0004427343 }
 0x46e   : > { %v1346_v49 = vsel %vm1345_vm7, %v1343_v44, %v1340_v30  ;;  %v1322_v52 = vmul.f32 0.6931472, %v1642_v33 }
 0x46f   : > { %v1352_v43 = vmul.f32 %v1636_v20, %v1351_v28  ;;  %v1337_v38 = vsel %vm1336_vm8, %v1334_v50, %v1331_v45  ;;  %v1358_v55 = vadd.f32 %v1346_v49, %v1302_v53 }
 0x470   : > { %v1328_v56 = vsel %vm1327_vm9, %v1325_v40, %v1322_v52  ;;  %v1357_v58 = vadd.f32 %v1337_v38, %v1301_v41 }
 0x471   : > { %v1356_v59 = vadd.f32 %v1328_v56, %v1300_v57 }
 0x473   : > { %v1644_v35 = vpop.eup %1643 }
 0x474   : > { %v1349_v42 = vmul.f32 0.6931472, %v1644_v35 }
 0x476   : > { %v1355_v48 = vsel %vm1354_vm6, %v1352_v43, %v1349_v42 }
 0x477   : > { %v1359_v54 = vadd.f32 %v1355_v48, %v1303_v47 }
 0x479   : > { %1382 = vmatpush.msrb.mxu1 %v1359_v54 }
 0x47b   : > { %1383 = vmatpush.msrb.mxu1 %v1358_v55 }
 0x47d   : > { %1384 = vmatpush.msrb.mxu1 %v1357_v58 }
 0x47f   : > { %1385 = vmatpush.msrb.mxu1 %v1356_v59 }
 0x480   : > { %1493 = vmatmul.msk.f32.vlgmr.msrb.gmra.mxu1 %vm742_vm4, %v1360_v60 }
 0x4fd   : > { %v1387_v46 = vpop.f32.mrf.mxu1 }
 0x4fe   : > { %v1388_v61 = vadd.f32 %v1387_v46, %v1365_v62 }
 0x500   : > { %1391 = vst.msk [vmem:[%s520_s23] sm:$0x7] %vm1390_vm10, %v1388_v61 }
 0x501 PF: > { %s25_s20 = sadd.s32 1, %s1667_s20   ;;  %s2070_s18 = smov %s1663_s19 }
 0x502   : > { %p22_p5 = scmp.ge.s32.totalorder %s25_s20, 4   ;;  %s2071_s19 = smov %s2073_s21 }
 0x504   :  { %24 = sbr.rel (!%p22_p5) target bundleno = 2 (0x2), region = 110 }

</bundles_post_ra>
